<compile_context>
chip_gen: v5e
topology: v5e:2x2
jax: 0.10.0
libtpu: 0.0.40
codegen_flags: <defaults>
</compile_context>

<pallas_src>
import functools

import jax
import jax.numpy as jnp
from jax.experimental import pallas as pl
from jax.experimental.pallas import tpu as pltpu


def _round_up(x, m):
    return ((x + m - 1) // m) * m


def _cdiv(a, b):
    return (a + b - 1) // b


def _nk_tiles(d_in, d_out):
    """Shared N/K tile + padding geometry (used by prepare_params and forward)."""
    # K: one big lane-dense tile (up to 2048) -> fewer k steps, less acc RMW traffic.
    d_in_128 = _round_up(d_in, 128)
    tk = min(2048, d_in_128)
    d_in_p = _round_up(d_in_128, tk)

    # N: lane-dense; prefer >= 2 j-blocks when d_out permits so the "parallel"
    # N axis can be sharded across v7x's 2 TensorCores.
    d_out_128 = _round_up(d_out, 128)
    tn_max = 1024
    if d_out_128 <= 128:
        n_blocks = 1
    else:
        n_blocks = max(2, _cdiv(d_out_128, tn_max))
    tn = _round_up(_cdiv(d_out_128, n_blocks), 128)
    d_out_p = n_blocks * tn
    return tn, tk, d_in_p, d_out_p


def _m_tile(batch, compute_dtype):
    """M tile: single i block (W streams once) for modest batch, else 256."""
    sub = 16 if jnp.dtype(compute_dtype).itemsize < 4 else 8
    bp_min = _round_up(batch, sub)
    if bp_min <= 512:
        tm = bp_min          # single i block -> weight streamed from HBM exactly once
    else:
        tm = 256             # fills the 256-wide MXU on v6e/v7x when compute-bound
    Bp = _round_up(bp_min, tm)
    return tm, Bp


def _linear_kernel_f32_out(x_ref, w_ref, b_ref, o_ref):
    # x_ref: (tm, tk)  w_ref: (tk, tn)  b_ref: (1, tn)  o_ref: (tm, tn) f32
    # Output block index ignores k, so o_ref is resident across the reduction:
    # accumulate directly into it (no scratch, no final copy pass).
    k = pl.program_id(2)

    @pl.when(k == 0)
    def _():
        o_ref[...] = jnp.zeros_like(o_ref)

    o_ref[...] += jnp.dot(x_ref[...], w_ref[...],
                          preferred_element_type=jnp.float32)

    @pl.when(k == pl.num_programs(2) - 1)
    def _():
        o_ref[...] += b_ref[...]


def _linear_kernel_acc(x_ref, w_ref, b_ref, o_ref, acc_ref):
    # Narrow-output path: f32 VMEM accumulator, cast in the epilogue.
    k = pl.program_id(2)

    @pl.when(k == 0)
    def _():
        acc_ref[...] = jnp.zeros_like(acc_ref)

    acc_ref[...] += jnp.dot(x_ref[...], w_ref[...],
                            preferred_element_type=jnp.float32)

    @pl.when(k == pl.num_programs(2) - 1)
    def _():
        o_ref[...] = (acc_ref[...] + b_ref[...]).astype(o_ref.dtype)


def prepare_params(weight, bias, *, compute_dtype=jnp.bfloat16):
    """One-time, off-hot-path prep: transpose (d_out,d_in)->(d_in_p,d_out_p), pad, cast."""
    d_out, d_in = weight.shape
    tn, tk, d_in_p, d_out_p = _nk_tiles(d_in, d_out)
    assert d_in_p % tk == 0 and d_out_p % tn == 0

    wt = weight.astype(compute_dtype).T                      # (d_in, d_out)
    w_padded = jnp.pad(wt, ((0, d_in_p - d_in), (0, d_out_p - d_out)))

    b_padded = jnp.pad(bias.astype(jnp.float32), (0, d_out_p - d_out))
    b_padded = b_padded.reshape(1, d_out_p)
    return w_padded, b_padded


@functools.partial(jax.jit,
                   static_argnames=("num_outputs", "d_in", "d_out",
                                    "compute_dtype"))
def linear_forward(src, trg_y, w_padded, b_padded, *, num_outputs, d_in, d_out,
                   compute_dtype=jnp.bfloat16):
    """Pallas equivalent of Linear.forward(src, trg, trg_y, ...).

    (trg, trg_teacher_forcing, epoch_portion are unused by the reference
    forward and are therefore not taken.)
    """
    B = src.shape[0]
    out_dtype = src.dtype

    tn, tk, d_in_p, d_out_p = _nk_tiles(d_in, d_out)
    tm, Bp = _m_tile(B, compute_dtype)

    # Geometry must match the one-time parameter prep.
    assert w_padded.shape == (d_in_p, d_out_p), (w_padded.shape, d_in_p, d_out_p)
    assert b_padded.shape == (1, d_out_p)
    assert d_in_p % tk == 0 and d_out_p % tn == 0 and Bp % tm == 0

    x = src.reshape(B, -1)
    assert x.shape[1] == d_in, (x.shape, d_in)
    x = x.astype(compute_dtype)
    if B != Bp or d_in != d_in_p:
        # Pad only when needed (no zeros+scatter copy on aligned shapes).
        x = jnp.pad(x, ((0, Bp - B), (0, d_in_p - d_in)))

    grid_i, grid_j, grid_k = Bp // tm, d_out_p // tn, d_in_p // tk
    grid = (grid_i, grid_j, grid_k)

    if jnp.dtype(out_dtype) == jnp.float32:
        kernel = _linear_kernel_f32_out
        scratch_shapes = []
    else:
        kernel = _linear_kernel_acc
        scratch_shapes = [pltpu.VMEM((tm, tn), jnp.float32)]

    itemsize = jnp.dtype(compute_dtype).itemsize
    x_bytes = Bp * d_in_p * itemsize
    w_bytes = d_in_p * d_out_p * itemsize
    b_bytes = d_out_p * 4
    o_bytes = Bp * d_out_p * jnp.dtype(out_dtype).itemsize

    out_padded = pl.pallas_call(
        kernel,
        out_shape=jax.ShapeDtypeStruct((Bp, d_out_p), out_dtype),
        grid_spec=pltpu.PrefetchScalarGridSpec(
            num_scalar_prefetch=0,
            grid=grid,
            in_specs=[
                pl.BlockSpec((tm, tk), lambda i, j, k: (i, k)),   # x tile
                pl.BlockSpec((tk, tn), lambda i, j, k: (k, j)),   # W tile (in, out)
                pl.BlockSpec((1, tn), lambda i, j, k: (0, j)),    # bias tile
            ],
            out_specs=pl.BlockSpec((tm, tn), lambda i, j, k: (i, j)),
            scratch_shapes=scratch_shapes,
        ),
        compiler_params=pltpu.CompilerParams(
            dimension_semantics=("parallel", "parallel", "arbitrary"),
            vmem_limit_bytes=48 * 1024 * 1024),
        cost_estimate=pl.CostEstimate(
            flops=2 * Bp * d_in_p * d_out_p,
            transcendentals=0,
            # Account for re-streaming: x is fetched once per j block, W once
            # per i block (with tm = Bp for modest batch, W streams exactly once).
            bytes_accessed=(x_bytes * grid_j + (w_bytes + b_bytes) * grid_i
                            + o_bytes)),
    )(x, w_padded, b_padded)

    pred = out_padded[:B, :d_out].reshape(B, -1, num_outputs)
    return pred, trg_y


if __name__ == "__main__":
    # Small shapes consistent with the module.
    B = 2
    seq_len_in = 8
    num_features = 4
    num_outputs = 3
    seq_len_out = 1

    d_in = seq_len_in * num_features      # 32
    d_out = seq_len_out * num_outputs     # 3

    key = jax.random.PRNGKey(0)
    k_src, k_trg_y, k_w, k_b = jax.random.split(key, 4)

    src = jax.random.normal(k_src, (B, seq_len_in, num_features), jnp.float32)
    trg_y = jax.random.normal(k_trg_y, (B, seq_len_out, num_outputs), jnp.float32)

    # Deterministic parameter init (PyTorch-style uniform(-1/sqrt(in), 1/sqrt(in))).
    bound = 1.0 / (d_in ** 0.5)
    weight = jax.random.uniform(k_w, (d_out, d_in), jnp.float32, -bound, bound)
    bias = jax.random.uniform(k_b, (d_out,), jnp.float32, -bound, bound)

    # One-time parameter prep (transpose + padding + bf16 cast) outside the hot path.
    w_padded, b_padded = prepare_params(weight, bias)

    pred, trg_y_out = linear_forward(src, trg_y, w_padded, b_padded,
                                     num_outputs=num_outputs,
                                     d_in=d_in, d_out=d_out)
    jax.block_until_ready((pred, trg_y_out))

    # Correctness checks.
    x2d = src.reshape(B, -1)
    # Exact-path reference: same bf16 inputs, f32 accumulation.
    ref_bf16 = (jnp.dot(x2d.astype(jnp.bfloat16),
                        weight.astype(jnp.bfloat16).T,
                        preferred_element_type=jnp.float32)
                + bias).reshape(B, -1, num_outputs)
    # Full-precision sanity reference.
    ref_f32 = (x2d @ weight.T + bias).reshape(B, -1, num_outputs)

    assert pred.shape == (B, seq_len_out, num_outputs)
    assert jnp.allclose(pred, ref_bf16, atol=2e-3, rtol=2e-3)
    assert jnp.allclose(pred, ref_f32, atol=1e-1, rtol=1e-1)
    assert jnp.array_equal(trg_y_out, trg_y)

    print("KERNEL_OK")
</pallas_src>

<mosaic_0001>
module attributes {stable_mosaic.version = 11 : i64} {
  func.func @_linear_kernel_f32_out(%arg0: i32, %arg1: i32, %arg2: i32, %arg3: memref<16x128xbf16, #tpu.memory_space<vmem>>, %arg4: memref<128x128xbf16, #tpu.memory_space<vmem>>, %arg5: memref<1x128xf32, #tpu.memory_space<vmem>>, %arg6: memref<16x128xf32, #tpu.memory_space<vmem>>) attributes {dimension_semantics = [#tpu.dimension_semantics<parallel>, #tpu.dimension_semantics<parallel>, #tpu.dimension_semantics<arbitrary>], iteration_bounds = array<i64: 1, 1, 1>, scalar_prefetch = 0 : i64, scratch_operands = 0 : i64, tpu.core_type = #tpu.core_type<tc>, window_params = [{transform_indices = @transform_0, window_bounds = array<i64: 16, 128>}, {transform_indices = @transform_1, window_bounds = array<i64: 128, 128>}, {transform_indices = @transform_2, window_bounds = array<i64: 1, 128>}, {transform_indices = @transform_3, window_bounds = array<i64: 16, 128>}]} {
    %c0_i32 = arith.constant 0 : i32
    %0 = arith.cmpi eq, %arg2, %c0_i32 : i32
    %1 = arith.extui %0 : i1 to i32
    %c0_i32_0 = arith.constant 0 : i32
    %2 = arith.cmpi ne, %1, %c0_i32_0 : i32
    scf.if %2 {
      %cst_10 = arith.constant 0.000000e+00 : f32
      %12 = vector.broadcast %cst_10 : f32 to vector<16x128xf32>
      %c0_11 = arith.constant 0 : index
      %c0_12 = arith.constant 0 : index
      %13 = vector.load %arg6[%c0_11, %c0_12] : memref<16x128xf32, #tpu.memory_space<vmem>>, vector<16x128xf32>
      tpu.vector_store %arg6[%c0_11, %c0_12], %12 {strides = array<i32>} : memref<16x128xf32, #tpu.memory_space<vmem>>, vector<16x128xf32>,
    } else {
    }
    %c0 = arith.constant 0 : index
    %c0_1 = arith.constant 0 : index
    %3 = vector.load %arg6[%c0, %c0_1] : memref<16x128xf32, #tpu.memory_space<vmem>>, vector<16x128xf32>
    %c0_2 = arith.constant 0 : index
    %c0_3 = arith.constant 0 : index
    %4 = vector.load %arg3[%c0_2, %c0_3] : memref<16x128xbf16, #tpu.memory_space<vmem>>, vector<16x128xbf16>
    %c0_4 = arith.constant 0 : index
    %c0_5 = arith.constant 0 : index
    %5 = vector.load %arg4[%c0_4, %c0_5] : memref<128x128xbf16, #tpu.memory_space<vmem>>, vector<128x128xbf16>
    %cst = arith.constant dense<0.000000e+00> : vector<16x128xf32>
    %6 = tpu.matmul %4, %5, %cst {dimension_numbers = #tpu.dot_dimension_numbers<[1], [0], [0], [1], [0, 0, 1, 1], [], []>} : vector<16x128xbf16>, vector<128x128xbf16>, vector<16x128xf32> -> vector<16x128xf32>
    %7 = arith.addf %3, %6 : vector<16x128xf32>
    %c0_6 = arith.constant 0 : index
    %c0_7 = arith.constant 0 : index
    %8 = vector.load %arg6[%c0_6, %c0_7] : memref<16x128xf32, #tpu.memory_space<vmem>>, vector<16x128xf32>
    tpu.vector_store %arg6[%c0_6, %c0_7], %7 {strides = array<i32>} : memref<16x128xf32, #tpu.memory_space<vmem>>, vector<16x128xf32>,
    %c0_i32_8 = arith.constant 0 : i32
    %9 = arith.cmpi eq, %arg2, %c0_i32_8 : i32
    %10 = arith.extui %9 : i1 to i32
    %c0_i32_9 = arith.constant 0 : i32
    %11 = arith.cmpi ne, %10, %c0_i32_9 : i32
    scf.if %11 {
      %c0_10 = arith.constant 0 : index
      %c0_11 = arith.constant 0 : index
      %12 = vector.load %arg6[%c0_10, %c0_11] : memref<16x128xf32, #tpu.memory_space<vmem>>, vector<16x128xf32>
      %c0_12 = arith.constant 0 : index
      %c0_13 = arith.constant 0 : index
      %13 = vector.load %arg5[%c0_12, %c0_13] : memref<1x128xf32, #tpu.memory_space<vmem>>, vector<1x128xf32>
      %14 = vector.broadcast %13 : vector<1x128xf32> to vector<16x128xf32>
      %15 = arith.addf %12, %14 : vector<16x128xf32>
      %c0_14 = arith.constant 0 : index
      %c0_15 = arith.constant 0 : index
      %16 = vector.load %arg6[%c0_14, %c0_15] : memref<16x128xf32, #tpu.memory_space<vmem>>, vector<16x128xf32>
      tpu.vector_store %arg6[%c0_14, %c0_15], %15 {strides = array<i32>} : memref<16x128xf32, #tpu.memory_space<vmem>>, vector<16x128xf32>,
    } else {
    }
    return
  }
  func.func @transform_0(%arg0: i32, %arg1: i32, %arg2: i32) -> (i32, i32) {
    %c0_i32 = arith.constant 0 : i32
    return %arg0, %arg2 : i32, i32
  }
  func.func @transform_1(%arg0: i32, %arg1: i32, %arg2: i32) -> (i32, i32) {
    %c0_i32 = arith.constant 0 : i32
    return %arg2, %arg1 : i32, i32
  }
  func.func @transform_2(%arg0: i32, %arg1: i32, %arg2: i32) -> (i32, i32) {
    %c0_i32 = arith.constant 0 : i32
    %c0_i32_0 = arith.constant 0 : i32
    return %c0_i32, %arg1 : i32, i32
  }
  func.func @transform_3(%arg0: i32, %arg1: i32, %arg2: i32) -> (i32, i32) {
    %c0_i32 = arith.constant 0 : i32
    return %arg0, %arg1 : i32, i32
  }
}

</mosaic_0001>

<bundles_post_ra>
// kernel: linear_forward.1
= control target key start
LH: loop header
LB: loop body
LE: loop exit
PB: predicated region body
PF: predicated region fallthrough
CT: control target
= control target key end

     0   :  { %8 = vsyncpa [#allocation3], 0  ;;  %s222_s15 = smov [#allocation2]   ;;  %s223_s17 = smov 64   ;;  %s260_s0 = inlined_call_operand.vmem [shape: bf16[16,128], index: 0, kind: input, shape index: {}]   ;;  %s261_s1 = inlined_call_operand.hbm [shape: bf16[128,128], index: 1, kind: input, shape index: {}]   ;;  %s262_s2 = inlined_call_operand.vmem [shape: f32[1,128], index: 2, kind: input, shape index: {}]   ;;  %s263_s3 = inlined_call_operand.vmem [shape: f32[16,128], index: 3, kind: output, shape index: {}]  }
   0x1   :  { %s15_s14 = sshll.u32 %s261_s1, 4  ;;  %s17_s16 = sshll.u32 %s222_s15, 4  ;;  %s16_s14 = int_to_ptr.hbm [resolvable:$true] %s15_s14  ;;  %s18_s16 = int_to_ptr.vmem [resolvable:$true] %s17_s16 }
   0x2   :  { %s224_s18 = smov 4  }
   0x3   :  { %23 = dma.hbm_to_vmem [thread:$0]  %s16_s14, 1024, %s18_s16, [#allocation3], %s223_s17, %s223_s17, %s224_s18  }
   0x4   :  { %220 = dma.done.wait [#allocation3], 1024  }
   0x5   :  { %221 = vsyncadd [#allocation3], 4294966272  ;;  %v190_v0 = vld [vmem:[#allocation2 + $0x38] sm:$0xff]  ;;  %v189_v1 = vld [vmem:[#allocation2 + $0x30] sm:$0xff] }
   0x6   :  { %110 = vmatpush.bf16.msra.mxu0 %v190_v0  ;;  %v188_v2 = vld [vmem:[#allocation2 + $0x28] sm:$0xff]  ;;  %v187_v3 = vld [vmem:[#allocation2 + $0x20] sm:$0xff]  ;;  %v186_v4 = vld [vmem:[#allocation2 + $0x18] sm:$0xff] }
   0x7   :  { %v185_v5 = vld [vmem:[#allocation2 + $0x10] sm:$0xff]  ;;  %v184_v6 = vld [vmem:[#allocation2 + $0x8] sm:$0xff]  ;;  %v183_v7 = vld [vmem:[#allocation2] sm:$0xff] }
   0x8   :  { %v182_v8 = vld [vmem:[%s260_s0] sm:$0xff] }
   0x9   :  { %v195_v9 = vld [vmem:[%s262_s2] ss:$0 sm:$0xff] }
   0xa   :  { %111 = vmatpush.bf16.msra.mxu0 %v189_v1 }
   0xe   :  { %112 = vmatpush.bf16.msra.mxu0 %v188_v2 }
  0x12   :  { %113 = vmatpush.bf16.msra.mxu0 %v187_v3 }
  0x16   :  { %114 = vmatpush.bf16.msra.mxu0 %v186_v4 }
  0x1a   :  { %115 = vmatpush.bf16.msra.mxu0 %v185_v5 }
  0x1e   :  { %116 = vmatpush.bf16.msra.mxu0 %v184_v6 }
  0x22   :  { %117 = vmatpush.bf16.msra.mxu0 %v183_v7 }
  0x25   :  { %118 = vmatmul.bf16.vlgmr.msra.gmra.mxu0 %v182_v8 }
  0xa2   :  { %v119_v10 = vpop.f32.mrf.mxu0 }
  0xa3   :  { %v137_v11 = vadd.f32 %v195_v9, %v119_v10 }
  0xa5   :  { %139 = vst [vmem:[%s263_s3] sm:$0xff] %v137_v11 }
  0xaa   :  { %v121_v12 = vpop.f32.mrf.mxu0 }
  0xab   :  { %v138_v13 = vadd.f32 %v195_v9, %v121_v12 }
  0xad   :  { %140 = vst [vmem:[%s263_s3 + $0x8] sm:$0xff] %v138_v13 }
  0xae   :  { %145 = vsyncpa [#allocation3], 1 }

</bundles_post_ra>
